<compile_context>
chip_gen: v7x
topology: tpu7x:2x2x1
jax: 0.10.0
libtpu: 0.0.40
codegen_flags: <defaults>
</compile_context>

<pallas_src>
import functools

import jax
import jax.numpy as jnp
from jax.experimental import pallas as pl
from jax.experimental.pallas import tpu as pltpu

SUBLANE = 8


def _round_up(n: int, m: int) -> int:
    return ((n + m - 1) // m) * m


def mlp_kernel(x_ref, w1_ref, b1_ref, w2_ref, b2_ref, o_ref):
    # fc1 -> ReLU -> fc2, all in f32 (MXU accumulates in f32). Feature dims are
    # tiny (10 / 100); Mosaic masks the unaligned matmul dims internally, so no
    # lane padding is materialized anywhere.
    h = jnp.dot(x_ref[...], w1_ref[...], preferred_element_type=jnp.float32)
    h = jnp.maximum(h + b1_ref[...], 0.0)
    out = jnp.dot(h, w2_ref[...], preferred_element_type=jnp.float32)
    o_ref[...] = (out + b2_ref[...]).astype(o_ref.dtype)


@functools.partial(jax.jit, static_argnames=("max_tile_b",))
def mlp_forward_pallas(x, w1, b1, w2, b2, *, max_tile_b: int = 2048):
    """Pallas path. x: (B, 10) f32, w1: (10, 100), b1: (100,), w2: (100, 10), b2: (10,)."""
    B, d_in = x.shape
    d_hid = w1.shape[1]
    d_out = w2.shape[1]

    # Batch tile: up to max_tile_b rows, multiple of 8 (sublane). grid uses cdiv
    # so the last block may be ragged -- Pallas masks the partial tile; rows are
    # independent so garbage in the ragged tail never reaches valid output rows.
    tile_b = min(max_tile_b, _round_up(B, SUBLANE))
    grid = (pl.cdiv(B, tile_b),)

    xf = x.astype(jnp.float32)
    w1f = w1.astype(jnp.float32)
    w2f = w2.astype(jnp.float32)
    b1r = b1.reshape(1, d_hid).astype(jnp.float32)
    b2r = b2.reshape(1, d_out).astype(jnp.float32)

    cost = pl.CostEstimate(
        flops=2 * B * (d_in * d_hid + d_hid * d_out),
        transcendentals=0,
        bytes_accessed=4 * (xf.size + w1f.size + b1r.size + w2f.size
                            + b2r.size + B * d_out),
    )

    vmem = pltpu.MemorySpace.VMEM
    out = pl.pallas_call(
        mlp_kernel,
        out_shape=jax.ShapeDtypeStruct((B, d_out), jnp.float32),
        grid_spec=pl.GridSpec(
            grid=grid,
            in_specs=[
                # x tile marches over the batch; weights/biases stay resident.
                pl.BlockSpec((tile_b, d_in), lambda i: (i, 0), memory_space=vmem),
                pl.BlockSpec((d_in, d_hid), lambda i: (0, 0), memory_space=vmem),
                pl.BlockSpec((1, d_hid), lambda i: (0, 0), memory_space=vmem),
                pl.BlockSpec((d_hid, d_out), lambda i: (0, 0), memory_space=vmem),
                pl.BlockSpec((1, d_out), lambda i: (0, 0), memory_space=vmem),
            ],
            out_specs=pl.BlockSpec((tile_b, d_out), lambda i: (i, 0),
                                   memory_space=vmem),
        ),
        compiler_params=pltpu.CompilerParams(
            dimension_semantics=("parallel",)),
        cost_estimate=cost,
    )(xf, w1f, b1r, w2f, b2r)
    return out


@functools.partial(jax.jit,
                   static_argnames=("small_batch_threshold", "max_tile_b"))
def mlp_forward(x, w1, b1, w2, b2, *, small_batch_threshold: int = 1024,
                max_tile_b: int = 2048):
    """Dispatcher: tiny batches go to the fused XLA path (overhead-bound),
    large batches go to the Pallas kernel."""
    if x.shape[0] <= small_batch_threshold:
        h = jnp.maximum(x @ w1 + b1[None, :], 0.0)
        return h @ w2 + b2[None, :]
    return mlp_forward_pallas(x, w1, b1, w2, b2, max_tile_b=max_tile_b)


def init_params(key):
    # Mimic nn.Linear defaults: U(-1/sqrt(fan_in), +1/sqrt(fan_in)); weights
    # stored transposed as (in, out) so the kernel computes x @ W directly.
    k1, k2, k3, k4 = jax.random.split(key, 4)
    in1, out1 = 10, 100
    in2, out2 = 100, 10
    bound1 = 1.0 / jnp.sqrt(in1)
    bound2 = 1.0 / jnp.sqrt(in2)
    w1 = jax.random.uniform(k1, (in1, out1), jnp.float32, -bound1, bound1)
    b1 = jax.random.uniform(k2, (out1,), jnp.float32, -bound1, bound1)
    w2 = jax.random.uniform(k3, (in2, out2), jnp.float32, -bound2, bound2)
    b2 = jax.random.uniform(k4, (out2,), jnp.float32, -bound2, bound2)
    return w1, b1, w2, b2


def ref_forward(x, w1, b1, w2, b2):
    # Pure-JAX f32 reference mirroring the PyTorch module.
    h = jnp.maximum(x @ w1 + b1.reshape(1, -1), 0.0)
    return h @ w2 + b2.reshape(1, -1)


if __name__ == "__main__":
    key = jax.random.PRNGKey(0)
    kx, kp, kx2 = jax.random.split(key, 3)
    w1, b1, w2, b2 = init_params(kp)

    # Small batch: run the Pallas kernel explicitly (single grid step).
    batch = 64
    x = jax.random.normal(kx, (batch, 10), dtype=jnp.float32)
    out = jax.block_until_ready(mlp_forward_pallas(x, w1, b1, w2, b2))
    ref = ref_forward(x, w1, b1, w2, b2)
    assert out.shape == (batch, 10)
    assert jnp.allclose(out, ref, atol=2e-2, rtol=2e-2), float(
        jnp.max(jnp.abs(out - ref)))

    # Multi-step grid with a ragged last tile (520 rows, tile 256 -> 3 steps).
    batch2 = 520
    x2 = jax.random.normal(kx2, (batch2, 10), dtype=jnp.float32)
    out2 = jax.block_until_ready(
        mlp_forward_pallas(x2, w1, b1, w2, b2, max_tile_b=256))
    ref2 = ref_forward(x2, w1, b1, w2, b2)
    assert out2.shape == (batch2, 10)
    assert jnp.allclose(out2, ref2, atol=2e-2, rtol=2e-2), float(
        jnp.max(jnp.abs(out2 - ref2)))

    # Dispatcher: small batch takes the fused XLA fallback path.
    out3 = jax.block_until_ready(mlp_forward(x, w1, b1, w2, b2))
    assert jnp.allclose(out3, ref, atol=2e-2, rtol=2e-2)

    print("KERNEL_OK")
</pallas_src>

<mosaic_0001>
module attributes {stable_mosaic.version = 11 : i64} {
  func.func @mlp_kernel(%arg0: i32, %arg1: memref<64x10xf32, #tpu.memory_space<vmem>>, %arg2: memref<10x100xf32, #tpu.memory_space<vmem>>, %arg3: memref<1x100xf32, #tpu.memory_space<vmem>>, %arg4: memref<100x10xf32, #tpu.memory_space<vmem>>, %arg5: memref<1x10xf32, #tpu.memory_space<vmem>>, %arg6: memref<64x10xf32, #tpu.memory_space<vmem>>) attributes {dimension_semantics = [#tpu.dimension_semantics<parallel>], iteration_bounds = array<i64: 1>, scalar_prefetch = 0 : i64, scratch_operands = 0 : i64, tpu.core_type = #tpu.core_type<tc>, window_params = [{transform_indices = @transform_0, window_bounds = array<i64: 64, 10>}, {pipeline_mode = #tpu.pipeline_mode<synchronous>, transform_indices = @transform_1, window_bounds = array<i64: 10, 100>}, {pipeline_mode = #tpu.pipeline_mode<synchronous>, transform_indices = @transform_2, window_bounds = array<i64: 1, 100>}, {pipeline_mode = #tpu.pipeline_mode<synchronous>, transform_indices = @transform_3, window_bounds = array<i64: 100, 10>}, {pipeline_mode = #tpu.pipeline_mode<synchronous>, transform_indices = @transform_4, window_bounds = array<i64: 1, 10>}, {transform_indices = @transform_5, window_bounds = array<i64: 64, 10>}]} {
    %c0 = arith.constant 0 : index
    %c0_0 = arith.constant 0 : index
    %0 = vector.load %arg1[%c0, %c0_0] : memref<64x10xf32, #tpu.memory_space<vmem>>, vector<64x10xf32>
    %c0_1 = arith.constant 0 : index
    %c0_2 = arith.constant 0 : index
    %1 = vector.load %arg2[%c0_1, %c0_2] : memref<10x100xf32, #tpu.memory_space<vmem>>, vector<10x100xf32>
    %cst = arith.constant dense<0.000000e+00> : vector<64x100xf32>
    %2 = tpu.matmul %0, %1, %cst {dimension_numbers = #tpu.dot_dimension_numbers<[1], [0], [0], [1], [0, 0, 1, 1], [], []>} : vector<64x10xf32>, vector<10x100xf32>, vector<64x100xf32> -> vector<64x100xf32>
    %c0_3 = arith.constant 0 : index
    %c0_4 = arith.constant 0 : index
    %3 = vector.load %arg3[%c0_3, %c0_4] : memref<1x100xf32, #tpu.memory_space<vmem>>, vector<1x100xf32>
    %4 = vector.broadcast %3 : vector<1x100xf32> to vector<64x100xf32>
    %5 = arith.addf %2, %4 : vector<64x100xf32>
    %cst_5 = arith.constant 0.000000e+00 : f32
    %6 = vector.broadcast %cst_5 : f32 to vector<64x100xf32>
    %7 = arith.maximumf %5, %6 : vector<64x100xf32>
    %c0_6 = arith.constant 0 : index
    %c0_7 = arith.constant 0 : index
    %8 = vector.load %arg4[%c0_6, %c0_7] : memref<100x10xf32, #tpu.memory_space<vmem>>, vector<100x10xf32>
    %cst_8 = arith.constant dense<0.000000e+00> : vector<64x10xf32>
    %9 = tpu.matmul %7, %8, %cst_8 {dimension_numbers = #tpu.dot_dimension_numbers<[1], [0], [0], [1], [0, 0, 1, 1], [], []>} : vector<64x100xf32>, vector<100x10xf32>, vector<64x10xf32> -> vector<64x10xf32>
    %c0_9 = arith.constant 0 : index
    %c0_10 = arith.constant 0 : index
    %10 = vector.load %arg5[%c0_9, %c0_10] : memref<1x10xf32, #tpu.memory_space<vmem>>, vector<1x10xf32>
    %11 = vector.broadcast %10 : vector<1x10xf32> to vector<64x10xf32>
    %12 = arith.addf %9, %11 : vector<64x10xf32>
    %c0_11 = arith.constant 0 : index
    %c0_12 = arith.constant 0 : index
    %13 = vector.load %arg6[%c0_11, %c0_12] : memref<64x10xf32, #tpu.memory_space<vmem>>, vector<64x10xf32>
    tpu.vector_store %arg6[%c0_11, %c0_12], %12 {strides = array<i32>} : memref<64x10xf32, #tpu.memory_space<vmem>>, vector<64x10xf32>,
    return
  }
  func.func @transform_0(%arg0: i32) -> (i32, i32) {
    %c0_i32 = arith.constant 0 : i32
    %c0_i32_0 = arith.constant 0 : i32
    return %arg0, %c0_i32 : i32, i32
  }
  func.func @transform_1(%arg0: i32) -> (i32, i32) {
    %c0_i32 = arith.constant 0 : i32
    %c0_i32_0 = arith.constant 0 : i32
    %c0_i32_1 = arith.constant 0 : i32
    return %c0_i32, %c0_i32_0 : i32, i32
  }
  func.func @transform_2(%arg0: i32) -> (i32, i32) {
    %c0_i32 = arith.constant 0 : i32
    %c0_i32_0 = arith.constant 0 : i32
    %c0_i32_1 = arith.constant 0 : i32
    return %c0_i32, %c0_i32_0 : i32, i32
  }
  func.func @transform_3(%arg0: i32) -> (i32, i32) {
    %c0_i32 = arith.constant 0 : i32
    %c0_i32_0 = arith.constant 0 : i32
    %c0_i32_1 = arith.constant 0 : i32
    return %c0_i32, %c0_i32_0 : i32, i32
  }
  func.func @transform_4(%arg0: i32) -> (i32, i32) {
    %c0_i32 = arith.constant 0 : i32
    %c0_i32_0 = arith.constant 0 : i32
    %c0_i32_1 = arith.constant 0 : i32
    return %c0_i32, %c0_i32_0 : i32, i32
  }
  func.func @transform_5(%arg0: i32) -> (i32, i32) {
    %c0_i32 = arith.constant 0 : i32
    %c0_i32_0 = arith.constant 0 : i32
    return %arg0, %c0_i32 : i32, i32
  }
}

</mosaic_0001>

<bundles_post_ra>
// kernel: mlp_forward_pallas.1
= control target key start
LH: loop header
LB: loop body
LE: loop exit
PB: predicated region body
PF: predicated region fallthrough
CT: control target
= control target key end

     0   :  { %vm62_vm0 = vcmask 1041408   ;;  %vm37_vm1 = vcmask 80896   ;;  %vm495_vm2 = vmmov 1   ;;  %vm224_vm4 = vcmask 1043456   ;;  %s649_s1 = inlined_call_operand.vmem [shape: f32[10,100], index: 1, kind: input, shape index: {}]   ;;  %s650_s0 = inlined_call_operand.vmem [shape: f32[64,10], index: 0, kind: input, shape index: {}]   ;;  %s651_s3 = inlined_call_operand.vmem [shape: f32[100,10], index: 3, kind: input, shape index: {}]   ;;  %s652_s2 = inlined_call_operand.vmem [shape: f32[1,100], index: 2, kind: input, shape index: {}]   ;;  %s653_s4 = inlined_call_operand.vmem [shape: f32[1,10], index: 4, kind: input, shape index: {}]   ;;  %s654_s5 = inlined_call_operand.vmem [shape: f32[64,10], index: 5, kind: output, shape index: {}]  }
   0x1   :  { %v28_v0 = vld [vmem:[%s649_s1] sm:$0xff]  ;;  %v29_v1 = vld [vmem:[%s649_s1 + $0x8] sm:$0x3]  ;;  %vm451_vm3 = vmpackc.low %vm62_vm0, %vm495_vm2  ;;  %vm199_vm5 = vcmask 818176  }
   0x2   :  { %v450_v2 = vpack.c.bf16 %v29_v1, %v28_v0  ;;  %v20_v3 = vld [vmem:[%s650_s0] sm:$0xff]  ;;  %v21_v4 = vld [vmem:[%s650_s0 + $0x8] sm:$0xff]  ;;  %v181_v7 = vld [vmem:[%s651_s3 + $0x10] sm:$0xff] }
   0x3   :  { %400 = vmatprep.mubr.msk.f32.mxu0 %vm37_vm1, %v20_v3  ;;  %v179_v5 = vld [vmem:[%s651_s3] sm:$0xff]  ;;  %v180_v6 = vld [vmem:[%s651_s3 + $0x8] sm:$0xff]  ;;  %v182_v8 = vld [vmem:[%s651_s3 + $0x18] sm:$0xff] }
   0x4   :  { %452 = vmatprep.subr.msk.bf16.mxu0 %vm451_vm3, %v450_v2  ;;  %v22_v9 = vld [vmem:[%s650_s0 + $0x10] sm:$0xff]  ;;  %v456_v10 = vpack.c.bf16 %v180_v6, %v179_v5  ;;  %v460_v11 = vpack.c.bf16 %v182_v8, %v181_v7  ;;  %v183_v12 = vld [vmem:[%s651_s3 + $0x20] sm:$0xff]  ;;  %v184_v13 = vld [vmem:[%s651_s3 + $0x28] sm:$0xff] }
   0x5   :  { %455 = vmatpush3.bf16.msk.msra.mxu0 %vm451_vm3, %v450_v2  ;;  %v23_v14 = vld [vmem:[%s650_s0 + $0x18] sm:$0xff]  ;;  %v24_v15 = vld [vmem:[%s650_s0 + $0x20] sm:$0xff]  ;;  %v464_v16 = vpack.c.bf16 %v184_v13, %v183_v12  ;;  %v185_v17 = vld [vmem:[%s651_s3 + $0x30] sm:$0xff] }
   0x6   :  { %457 = vmatprep.subr.bf16.mxu0 %v456_v10  ;;  %480 = vmatprep.subr.bf16.mxu1 %v456_v10  ;;  %v186_v18 = vld [vmem:[%s651_s3 + $0x38] sm:$0xff]  ;;  %v25_v19 = vld [vmem:[%s650_s0 + $0x28] sm:$0xff]  ;;  %v26_v20 = vld [vmem:[%s650_s0 + $0x30] sm:$0xff] }
   0x7   :  { %487 = vmatpush3.bf16.msra.mxu1 %v456_v10  ;;  %v468_v21 = vpack.c.bf16 %v186_v18, %v185_v17  ;;  %v187_v22 = vld [vmem:[%s651_s3 + $0x40] sm:$0xff]  ;;  %v188_v23 = vld [vmem:[%s651_s3 + $0x48] sm:$0xff]  ;;  %v27_v24 = vld [vmem:[%s650_s0 + $0x38] sm:$0xff] }
   0x8   :  { %401 = vmatmul.mubr.msk.f32.vlgmr.msra.gmra.mrb[0].mxu0 %vm37_vm1, %v21_v4  ;;  %481 = vmatprep.subr.bf16.mxu1 %v460_v11  ;;  %v472_v25 = vpack.c.bf16 %v188_v23, %v187_v22  ;;  %v189_v26 = vld [vmem:[%s651_s3 + $0x50] sm:$0xff]  ;;  %v190_v27 = vld [vmem:[%s651_s3 + $0x58] sm:$0xff]  ;;  %v191_v29 = vld [vmem:[%s651_s3 + $0x60] sm:$0xf] }
   0x9   :  { %403 = vmatprep.mubr.msk.f32.mxu0 %vm37_vm1, %v22_v9  ;;  %459 = vmatpush3.bf16.msra.mxu0 %v456_v10  ;;  %v476_v28 = vpack.c.bf16 %v190_v27, %v189_v26  ;;  %v345_v30 = vld [vmem:[%s652_s2] ss:$0 sm:$0xff] }
   0xa   :  { %461 = vmatprep.subr.bf16.mxu0 %v460_v11  ;;  %v355_v55 = vld [vmem:[%s653_s4] ss:$0 sm:$0xff] }
   0xb   :  { %488 = vmatpush3.bf16.msra.mxu1 %v460_v11 }
   0xc   :  { %404 = vmatmul.mubr.msk.f32.gmra.mrb[2].mxu0 %vm37_vm1, %v23_v14  ;;  %482 = vmatprep.subr.bf16.mxu1 %v464_v16 }
   0xd   :  { %406 = vmatprep.mubr.msk.f32.mxu0 %vm37_vm1, %v24_v15  ;;  %463 = vmatpush3.bf16.msra.mxu0 %v460_v11 }
   0xe   :  { %465 = vmatprep.subr.bf16.mxu0 %v464_v16 }
   0xf   :  { %489 = vmatpush3.bf16.msra.mxu1 %v464_v16 }
  0x10   :  { %407 = vmatmul.mubr.msk.f32.gmra.mrb[4].mxu0 %vm37_vm1, %v25_v19  ;;  %483 = vmatprep.subr.bf16.mxu1 %v468_v21 }
  0x11   :  { %409 = vmatprep.mubr.msk.f32.mxu0 %vm37_vm1, %v26_v20  ;;  %467 = vmatpush3.bf16.msra.mxu0 %v464_v16 }
  0x12   :  { %469 = vmatprep.subr.bf16.mxu0 %v468_v21 }
  0x13   :  { %490 = vmatpush3.bf16.msra.mxu1 %v468_v21 }
  0x14   :  { %410 = vmatmul.mubr.msk.f32.gmra.mrb[6].mxu0 %vm37_vm1, %v27_v24  ;;  %484 = vmatprep.subr.bf16.mxu1 %v472_v25 }
  0x15   :  { %471 = vmatpush3.bf16.msra.mxu0 %v468_v21 }
  0x16   :  { %473 = vmatprep.subr.bf16.mxu0 %v472_v25 }
  0x17   :  { %491 = vmatpush3.bf16.msra.mxu1 %v472_v25 }
  0x18   :  { %485 = vmatprep.subr.bf16.mxu1 %v476_v28 }
  0x19   :  { %475 = vmatpush3.bf16.msra.mxu0 %v472_v25 }
  0x1a   :  { %477 = vmatprep.subr.bf16.mxu0 %v476_v28 }
  0x1b   :  { %492 = vmatpush3.bf16.msra.mxu1 %v476_v28 }
  0x1c   :  { %486 = vmatprep.subr.msk.mxu1 %vm224_vm4, %v191_v29 }
  0x1d   :  { %479 = vmatpush3.bf16.msra.mxu0 %v476_v28 }
  0x1e   :  { %436 = vmatprep.subr.msk.mxu0 %vm224_vm4, %v191_v29 }
  0x1f   :  { %493 = vmatpush3.msk.msra.mxu1 %vm224_vm4, %v191_v29 }
  0x21   :  { %437 = vmatpush3.msk.msra.mxu0 %vm224_vm4, %v191_v29 }
  0xdb   :  { %v402_v31 = vpop.f32.mrb[0].mxu0 }
  0xdc   :  { %v138_v32 = vadd.f32 %v402_v31, %v345_v30  ;;  %v132_v33 = vpop.f32.mrb[1].mxu0 }
  0xdd   :  { %v133_v34 = vadd.f32 %v345_v30, %v132_v33 }
  0xde   :  { %v172_v37 = vmax.f32 %v138_v32, 0.0 }
  0xdf   :  { %v171_v35 = vmax.f32 %v133_v34, 0.0  ;;  %v405_v36 = vpop.f32.mrb[2].mxu0 }
  0xe0   :  { %v148_v38 = vadd.f32 %v405_v36, %v345_v30  ;;  %v142_v39 = vpop.f32.mrb[3].mxu0 }
  0xe1   :  { %v143_v40 = vadd.f32 %v345_v30, %v142_v39  ;;  %438 = vmatprep.mubr.msk.f32.mxu0 %vm199_vm5, %v171_v35 }
  0xe2   :  { %439 = vmatmul.mubr.msk.f32.vlgmr.msra.gmra.mrb[8].mxu0 %vm199_vm5, %v172_v37  ;;  %v174_v43 = vmax.f32 %v148_v38, 0.0 }
  0xe3   :  { %v173_v41 = vmax.f32 %v143_v40, 0.0  ;;  %v408_v42 = vpop.f32.mrb[4].mxu0 }
  0xe4   :  { %v158_v44 = vadd.f32 %v408_v42, %v345_v30  ;;  %v152_v45 = vpop.f32.mrb[5].mxu0 }
  0xe5   :  { %v153_v46 = vadd.f32 %v345_v30, %v152_v45  ;;  %441 = vmatprep.mubr.msk.f32.mxu1 %vm199_vm5, %v173_v41 }
  0xe6   :  { %442 = vmatmul.mubr.msk.f32.vlgmr.msra.gmra.mrb[0].mxu1 %vm199_vm5, %v174_v43  ;;  %v176_v49 = vmax.f32 %v158_v44, 0.0 }
  0xe7   :  { %v175_v47 = vmax.f32 %v153_v46, 0.0  ;;  %v411_v48 = vpop.f32.mrb[6].mxu0 }
  0xe8   :  { %v168_v50 = vadd.f32 %v411_v48, %v345_v30  ;;  %v162_v51 = vpop.f32.mrb[7].mxu0 }
  0xe9   :  { %v163_v52 = vadd.f32 %v345_v30, %v162_v51  ;;  %444 = vmatprep.mubr.msk.f32.mxu1 %vm199_vm5, %v175_v47 }
  0xea   :  { %445 = vmatmul.mubr.msk.f32.gmra.mrb[2].mxu1 %vm199_vm5, %v176_v49  ;;  %v178_v54 = vmax.f32 %v168_v50, 0.0 }
  0xeb   :  { %v177_v53 = vmax.f32 %v163_v52, 0.0 }
  0xed   :  { %447 = vmatprep.mubr.msk.f32.mxu1 %vm199_vm5, %v177_v53 }
  0xee   :  { %448 = vmatmul.mubr.msk.f32.gmra.mrb[4].mxu1 %vm199_vm5, %v178_v54 }
 0x1b5   :  { %v440_v56 = vpop.f32.mrb[8].mxu0 }
 0x1b6   :  { %v300_v57 = vadd.f32 %v440_v56, %v355_v55  ;;  %v294_v58 = vpop.f32.mrb[9].mxu0 }
 0x1b7   :  { %v295_v59 = vadd.f32 %v355_v55, %v294_v58 }
 0x1b8   :  { %334 = vst.msk [vmem:[%s654_s5 + $0x8] sm:$0xff] %vm37_vm1, %v300_v57 }
 0x1b9   :  { %333 = vst.msk [vmem:[%s654_s5] sm:$0xff] %vm37_vm1, %v295_v59  ;;  %v443_v60 = vpop.f32.mrb[0].mxu1 }
 0x1ba   :  { %v310_v61 = vadd.f32 %v443_v60, %v355_v55  ;;  %v304_v62 = vpop.f32.mrb[1].mxu1 }
 0x1bb   :  { %v305_v63 = vadd.f32 %v355_v55, %v304_v62 }
 0x1bc   :  { %336 = vst.msk [vmem:[%s654_s5 + $0x18] sm:$0xff] %vm37_vm1, %v310_v61 }
 0x1bd   :  { %335 = vst.msk [vmem:[%s654_s5 + $0x10] sm:$0xff] %vm37_vm1, %v305_v63  ;;  %v446_v0 = vpop.f32.mrb[2].mxu1 }
 0x1be   :  { %v320_v1 = vadd.f32 %v446_v0, %v355_v55  ;;  %v314_v2 = vpop.f32.mrb[3].mxu1 }
 0x1bf   :  { %v315_v3 = vadd.f32 %v355_v55, %v314_v2 }
 0x1c0   :  { %338 = vst.msk [vmem:[%s654_s5 + $0x28] sm:$0xff] %vm37_vm1, %v320_v1 }
 0x1c1   :  { %337 = vst.msk [vmem:[%s654_s5 + $0x20] sm:$0xff] %vm37_vm1, %v315_v3  ;;  %v449_v4 = vpop.f32.mrb[4].mxu1 }
 0x1c2   :  { %v330_v5 = vadd.f32 %v449_v4, %v355_v55  ;;  %v324_v6 = vpop.f32.mrb[5].mxu1 }
 0x1c3   :  { %v325_v7 = vadd.f32 %v355_v55, %v324_v6 }
 0x1c4   :  { %340 = vst.msk [vmem:[%s654_s5 + $0x38] sm:$0xff] %vm37_vm1, %v330_v5 }
 0x1c5   :  { %339 = vst.msk [vmem:[%s654_s5 + $0x30] sm:$0xff] %vm37_vm1, %v325_v7 }

</bundles_post_ra>
